<compile_context>
chip_gen: v5e
topology: v5e:2x2
jax: 0.10.0
libtpu: 0.0.40
codegen_flags: <defaults>
</compile_context>

<pallas_src>
import numpy as np
import jax
import jax.numpy as jnp
from jax import lax
from jax.experimental import pallas as pl
from jax.experimental.pallas import tpu as pltpu

EMBED_DIM = 32
LSTM_DIM = 32
TYPE_DIM = 4
NUM_DIM = 3
FC_HID = 16


def _round_up(x, m):
    return ((x + m - 1) // m) * m


def card_strength_kernel(tok_ref, len_ref, side_ref,
                         wtok_ref, whh_ref, w1h_ref, w2_ref, b2_ref,
                         out_ref, gx_ref):
    T, TB = tok_ref.shape
    H = whh_ref.shape[0]
    Vp = wtok_ref.shape[0]

    # ---- Phase 1: hoisted input projection ---------------------------------
    # gates_x[t, b, :] = (text_emb[token[t,b]] @ W_ih^T + b_ih + b_hh) * gate_scale,
    # realized as one-hot @ folded-table bf16 matmuls, built in row chunks so
    # the transient one-hot stays small, and stashed in the gx VMEM scratch.
    tok = tok_ref[...]                                              # (T, TB) i32
    wtok = wtok_ref[...]                                            # (Vp, 4H) bf16
    iota = lax.broadcasted_iota(jnp.int32, (1, 1, Vp), 2)
    t_chunk = max(1, 512 // TB)                                     # ~512 rows/chunk
    for t0 in range(0, T, t_chunk):
        t1 = min(T, t0 + t_chunk)
        ct = t1 - t0
        onehot = (tok[t0:t1, :, None] == iota).astype(jnp.bfloat16)  # (ct, TB, Vp)
        gx_ref[t0 * TB:t1 * TB, :] = jnp.dot(
            onehot.reshape(ct * TB, Vp), wtok,
            preferred_element_type=jnp.float32)                      # (ct*TB, 4H)

    # ---- Phase 2: LSTM recurrence (unrolled; only h @ W_hh is serial) -------
    # TODO(synk): if T grows beyond ~16, switch to lax.fori_loop(..., unroll=True)
    # reading gx_ref[pl.ds(pl.multiple_of(t*TB, 8), TB)] to avoid code bloat.
    lengths = len_ref[...]                                          # (TB, 1) i32
    whh = whh_ref[...]                                              # (H, 4H) bf16
    h = jnp.zeros((TB, H), jnp.float32)
    c = jnp.zeros((TB, H), jnp.float32)
    for t in range(T):
        gates = (gx_ref[t * TB:(t + 1) * TB, :]
                 + jnp.dot(h.astype(jnp.bfloat16), whh,
                           preferred_element_type=jnp.float32))
        # Single full-slab transcendental; g-gate pre-activation already
        # carries a folded x2 so tanh(x) = 2*sigmoid(2x) - 1.
        sig = jax.nn.sigmoid(gates)
        i = sig[:, 0 * H:1 * H]
        f = sig[:, 1 * H:2 * H]
        g = 2.0 * sig[:, 2 * H:3 * H] - 1.0
        o = sig[:, 3 * H:4 * H]
        c_new = f * c + i * g
        h_new = o * jnp.tanh(c_new)
        # pack_padded_sequence semantics: freeze state once t >= length[b].
        keep = t < lengths                                          # (TB, 1) bool
        h = jnp.where(keep, h_new, h)
        c = jnp.where(keep, c_new, c)

    # ---- Phase 3: MLP head ---------------------------------------------------
    # side_ref already holds type_emb/numeric contribution + b1 (wrapper).
    hid = jnp.maximum(
        jnp.dot(h, w1h_ref[...], preferred_element_type=jnp.float32)
        + side_ref[...], 0.0)                                       # (TB, 16) ReLU
    # Lane-dense (1, TB) store: out = W2 @ hid^T + b2.
    out_ref[...] = (lax.dot_general(w2_ref[...], hid,
                                    (((1,), (1,)), ((), ())),
                                    preferred_element_type=jnp.float32)
                    + b2_ref[...])


def init_params(key, vocab_size, type_vocab_size):
    ks = jax.random.split(key, 10)
    s = 0.1
    text_emb = s * jax.random.normal(ks[0], (vocab_size + 1, EMBED_DIM), jnp.float32)
    text_emb = text_emb.at[0].set(0.0)  # padding_idx=0
    type_emb = s * jax.random.normal(ks[1], (type_vocab_size, TYPE_DIM), jnp.float32)
    w_ih = s * jax.random.normal(ks[2], (4 * LSTM_DIM, EMBED_DIM), jnp.float32)
    w_hh = s * jax.random.normal(ks[3], (4 * LSTM_DIM, LSTM_DIM), jnp.float32)
    b_ih = s * jax.random.normal(ks[4], (4 * LSTM_DIM,), jnp.float32)
    b_hh = s * jax.random.normal(ks[5], (4 * LSTM_DIM,), jnp.float32)
    w1 = s * jax.random.normal(ks[6], (FC_HID, LSTM_DIM + TYPE_DIM + NUM_DIM), jnp.float32)
    b1 = s * jax.random.normal(ks[7], (FC_HID,), jnp.float32)
    w2 = s * jax.random.normal(ks[8], (1, FC_HID), jnp.float32)
    b2 = s * jax.random.normal(ks[9], (1,), jnp.float32)
    return dict(text_emb=text_emb, type_emb=type_emb, w_ih=w_ih, w_hh=w_hh,
                b_ih=b_ih, b_hh=b_hh, w1=w1, b1=b1, w2=w2, b2=b2)


def card_strength_forward(params, text_tokens, lengths, struct_features,
                          *, block_b=None):
    B, T = text_tokens.shape
    H = LSTM_DIM

    # Batch tiling: single tile for small batches (block == full dims), else a
    # multiple of 128 aiming for >=2 tiles (megacore on v7x), capped at 512.
    if block_b is None:
        B8 = _round_up(B, 8)
        if B8 <= 256:
            block_b = B8
        else:
            block_b = min(_round_up(-(-B // 2), 128), 512)
    B_pad = _round_up(B, block_b)
    pad = B_pad - B
    nb = B_pad // block_b

    tok = text_tokens.astype(jnp.int32)
    lens = lengths.astype(jnp.int32)
    sf = struct_features.astype(jnp.float32)
    if pad:
        tok = jnp.pad(tok, ((0, pad), (0, 0)))       # padded rows: token 0, len 0
        lens = jnp.pad(lens, ((0, pad),))
        sf = jnp.pad(sf, ((0, pad), (0, 0)))

    # Lane-dense time-major int32 tokens: (T, B_pad).
    tok_tm = jnp.transpose(tok, (1, 0))
    lens2d = lens.reshape(B_pad, 1)

    # MLP side contribution precomputed in the wrapper (merges two K<=4
    # matmuls and two lane-padded tiles out of the kernel):
    #   side = type_emb[type_idx] @ W1_type^T + numeric @ W1_num^T + b1
    type_idx = sf[:, -1].astype(jnp.int32)
    type_vec = jnp.take(params['type_emb'], type_idx, axis=0)      # (B_pad, 4)
    numeric = sf[:, :NUM_DIM]                                      # (B_pad, 3)
    w1_t = params['w1'].T                                          # (39, 16)
    w1h = w1_t[:H]                                                 # (32, 16) f32
    side = (type_vec @ w1_t[H:H + TYPE_DIM]
            + numeric @ w1_t[H + TYPE_DIM:]
            + params['b1'][None, :])                               # (B_pad, 16)

    # Fold embedding gather + LSTM bias into one table (exact: each one-hot
    # row has exactly one 1, including padding token 0), and fold x2 into the
    # g-gate columns so the kernel needs a single sigmoid per step.
    bias = params['b_ih'] + params['b_hh']
    wtok = params['text_emb'] @ params['w_ih'].T + bias[None, :]   # (V+1, 4H)
    gate_scale = jnp.ones((4 * H,), jnp.float32).at[2 * H:3 * H].set(2.0)
    wtok = wtok * gate_scale[None, :]
    whh = (params['w_hh'].T * gate_scale[None, :])                 # (H, 4H)
    V1 = wtok.shape[0]
    Vp = _round_up(V1, 128)
    # TODO(synk): for large vocabularies keep the folded table in HBM
    # (BlockSpec(memory_space=pl.ANY)) and DMA-gather the needed rows via
    # scalar-prefetched token ids instead of shipping the whole (Vp, 4H) table.
    wtok = jnp.pad(wtok, ((0, Vp - V1), (0, 0))).astype(jnp.bfloat16)
    whh = whh.astype(jnp.bfloat16)
    w2 = params['w2'].reshape(1, FC_HID)
    b2 = params['b2'].reshape(1, 1)

    def const_spec(arr):
        return pl.BlockSpec(arr.shape, lambda b: (0, 0))

    grid_spec = pltpu.PrefetchScalarGridSpec(
        num_scalar_prefetch=0,
        grid=(nb,),
        in_specs=[
            pl.BlockSpec((T, block_b), lambda b: (0, b)),          # tokens (lane-dense)
            pl.BlockSpec((block_b, 1), lambda b: (b, 0)),          # lengths
            pl.BlockSpec((block_b, FC_HID), lambda b: (b, 0)),     # MLP side + b1
            const_spec(wtok), const_spec(whh),
            const_spec(w1h), const_spec(w2), const_spec(b2),
        ],
        out_specs=pl.BlockSpec((1, block_b), lambda b: (0, b)),
        scratch_shapes=[pltpu.VMEM((T * block_b, 4 * H), jnp.float32)],
    )

    out = pl.pallas_call(
        card_strength_kernel,
        out_shape=jax.ShapeDtypeStruct((1, B_pad), jnp.float32),
        grid_spec=grid_spec,
        compiler_params=pltpu.CompilerParams(
            dimension_semantics=("parallel",)),
    )(tok_tm, lens2d, side, wtok, whh, w1h, w2, b2)

    return out[:, :B].T                                            # (B, 1)


def reference_forward(params, text_tokens, lengths, struct_features):
    """Pure-JAX f32 reference mirroring the PyTorch forward."""
    B, T = text_tokens.shape
    H = LSTM_DIM
    embedded = jnp.take(params['text_emb'], text_tokens, axis=0)
    wih_t, whh_t = params['w_ih'].T, params['w_hh'].T
    bias = params['b_ih'] + params['b_hh']
    h = jnp.zeros((B, H), jnp.float32)
    c = jnp.zeros((B, H), jnp.float32)
    for t in range(T):
        x_t = embedded[:, t, :]
        gates = x_t @ wih_t + h @ whh_t + bias
        i = jax.nn.sigmoid(gates[:, :H])
        f = jax.nn.sigmoid(gates[:, H:2 * H])
        g = jnp.tanh(gates[:, 2 * H:3 * H])
        o = jax.nn.sigmoid(gates[:, 3 * H:])
        c_new = f * c + i * g
        h_new = o * jnp.tanh(c_new)
        mask = (t < lengths)[:, None]
        h = jnp.where(mask, h_new, h)
        c = jnp.where(mask, c_new, c)
    type_idx = struct_features[:, -1].astype(jnp.int32)
    type_vec = jnp.take(params['type_emb'], type_idx, axis=0)
    numeric = struct_features[:, :3]
    combined = jnp.concatenate([h, type_vec, numeric], axis=1)
    hid = jnp.maximum(combined @ params['w1'].T + params['b1'], 0.0)
    return hid @ params['w2'].T + params['b2']


if __name__ == "__main__":
    vocab_size = 20
    type_vocab_size = 5
    B, T = 2, 8

    key = jax.random.PRNGKey(0)
    k_param, k_tok, k_num, k_type = jax.random.split(key, 4)

    params = init_params(k_param, vocab_size, type_vocab_size)

    lengths = jnp.array([5, 8], dtype=jnp.int32)
    tokens = jax.random.randint(k_tok, (B, T), 1, vocab_size + 1, dtype=jnp.int32)
    # zero-pad past each sequence's length (as pad_sequence would)
    pad_mask = jnp.arange(T)[None, :] < lengths[:, None]
    tokens = jnp.where(pad_mask, tokens, 0)

    numeric = jax.random.normal(k_num, (B, NUM_DIM), jnp.float32)
    type_idx = jax.random.randint(k_type, (B,), 0, type_vocab_size, dtype=jnp.int32)
    struct_features = jnp.concatenate(
        [numeric, type_idx.astype(jnp.float32)[:, None]], axis=1)   # (B, 4)

    out = card_strength_forward(params, tokens, lengths, struct_features)
    out = jax.block_until_ready(out)

    ref = reference_forward(params, tokens, lengths, struct_features)
    # bf16 MXU matmuls (f32 accumulation) in the kernel -> loosened tolerance.
    np.testing.assert_allclose(np.asarray(out), np.asarray(ref), rtol=1e-2, atol=1e-2)

    print("KERNEL_OK")
</pallas_src>

<mosaic_0001>
module attributes {stable_mosaic.version = 11 : i64} {
  func.func @card_strength_kernel(%arg0: i32, %arg1: memref<8x8xi32, #tpu.memory_space<vmem>>, %arg2: memref<8x1xi32, #tpu.memory_space<vmem>>, %arg3: memref<8x16xf32, #tpu.memory_space<vmem>>, %arg4: memref<128x128xbf16, #tpu.memory_space<vmem>>, %arg5: memref<32x128xbf16, #tpu.memory_space<vmem>>, %arg6: memref<32x16xf32, #tpu.memory_space<vmem>>, %arg7: memref<1x16xf32, #tpu.memory_space<vmem>>, %arg8: memref<1x1xf32, #tpu.memory_space<vmem>>, %arg9: memref<1x8xf32, #tpu.memory_space<vmem>>, %arg10: memref<64x128xf32, #tpu.memory_space<vmem>>) attributes {dimension_semantics = [#tpu.dimension_semantics<parallel>], iteration_bounds = array<i64: 1>, scalar_prefetch = 0 : i64, scratch_operands = 1 : i64, tpu.core_type = #tpu.core_type<tc>, window_params = [{transform_indices = @transform_0, window_bounds = array<i64: 8, 8>}, {transform_indices = @transform_1, window_bounds = array<i64: 8, 1>}, {transform_indices = @transform_2, window_bounds = array<i64: 8, 16>}, {pipeline_mode = #tpu.pipeline_mode<synchronous>, transform_indices = @transform_3, window_bounds = array<i64: 128, 128>}, {pipeline_mode = #tpu.pipeline_mode<synchronous>, transform_indices = @transform_4, window_bounds = array<i64: 32, 128>}, {pipeline_mode = #tpu.pipeline_mode<synchronous>, transform_indices = @transform_5, window_bounds = array<i64: 32, 16>}, {pipeline_mode = #tpu.pipeline_mode<synchronous>, transform_indices = @transform_6, window_bounds = array<i64: 1, 16>}, {pipeline_mode = #tpu.pipeline_mode<synchronous>, transform_indices = @transform_7, window_bounds = array<i64: 1, 1>}, {transform_indices = @transform_8, window_bounds = array<i64: 1, 8>}]} {
    %c0 = arith.constant 0 : index
    %c0_0 = arith.constant 0 : index
    %0 = vector.load %arg1[%c0, %c0_0] : memref<8x8xi32, #tpu.memory_space<vmem>>, vector<8x8xi32>
    %c0_1 = arith.constant 0 : index
    %c0_2 = arith.constant 0 : index
    %1 = vector.load %arg4[%c0_1, %c0_2] : memref<128x128xbf16, #tpu.memory_space<vmem>>, vector<128x128xbf16>
    %2 = tpu.iota {dimensions = array<i32: 2>} : vector<1x1x128xi32>
    %3 = vector.shape_cast %0 : vector<8x8xi32> to vector<8x8x1xi32>
    %4 = vector.broadcast %3 : vector<8x8x1xi32> to vector<8x8x128xi32>
    %5 = vector.broadcast %2 : vector<1x1x128xi32> to vector<8x8x128xi32>
    %6 = arith.cmpi eq, %4, %5 : vector<8x8x128xi32>
    %7 = arith.extui %6 : vector<8x8x128xi1> to vector<8x8x128xi32>
    %8 = arith.sitofp %7 : vector<8x8x128xi32> to vector<8x8x128xf32>
    %9 = arith.truncf %8 : vector<8x8x128xf32> to vector<8x8x128xbf16>
    %10 = vector.shape_cast %9 : vector<8x8x128xbf16> to vector<64x128xbf16>
    %cst = arith.constant dense<0.000000e+00> : vector<64x128xf32>
    %11 = tpu.matmul %10, %1, %cst {dimension_numbers = #tpu.dot_dimension_numbers<[1], [0], [0], [1], [0, 0, 1, 1], [], []>} : vector<64x128xbf16>, vector<128x128xbf16>, vector<64x128xf32> -> vector<64x128xf32>
    %c0_3 = arith.constant 0 : index
    %c0_4 = arith.constant 0 : index
    %12 = vector.load %arg10[%c0_3, %c0_4] : memref<64x128xf32, #tpu.memory_space<vmem>>, vector<64x128xf32>
    tpu.vector_store %arg10[%c0_3, %c0_4], %11 {strides = array<i32>} : memref<64x128xf32, #tpu.memory_space<vmem>>, vector<64x128xf32>,
    %c0_5 = arith.constant 0 : index
    %c0_6 = arith.constant 0 : index
    %13 = vector.load %arg2[%c0_5, %c0_6] : memref<8x1xi32, #tpu.memory_space<vmem>>, vector<8x1xi32>
    %c0_7 = arith.constant 0 : index
    %c0_8 = arith.constant 0 : index
    %14 = vector.load %arg5[%c0_7, %c0_8] : memref<32x128xbf16, #tpu.memory_space<vmem>>, vector<32x128xbf16>
    %cst_9 = arith.constant 0.000000e+00 : f32
    %15 = vector.broadcast %cst_9 : f32 to vector<8x32xf32>
    %cst_10 = arith.constant 0.000000e+00 : f32
    %16 = vector.broadcast %cst_10 : f32 to vector<8x32xf32>
    %c0_11 = arith.constant 0 : index
    %c0_12 = arith.constant 0 : index
    %17 = vector.load %arg10[%c0_11, %c0_12] : memref<64x128xf32, #tpu.memory_space<vmem>>, vector<8x128xf32>
    %18 = arith.truncf %15 : vector<8x32xf32> to vector<8x32xbf16>
    %cst_13 = arith.constant dense<0.000000e+00> : vector<8x128xf32>
    %19 = tpu.matmul %18, %14, %cst_13 {dimension_numbers = #tpu.dot_dimension_numbers<[1], [0], [0], [1], [0, 0, 1, 1], [], []>} : vector<8x32xbf16>, vector<32x128xbf16>, vector<8x128xf32> -> vector<8x128xf32>
    %20 = arith.addf %17, %19 : vector<8x128xf32>
    %21 = arith.negf %20 : vector<8x128xf32>
    %22 = math.exp %21 : vector<8x128xf32>
    %cst_14 = arith.constant 1.000000e+00 : f32
    %23 = vector.broadcast %cst_14 : f32 to vector<8x128xf32>
    %24 = arith.addf %23, %22 : vector<8x128xf32>
    %25 = arith.divf %23, %24 : vector<8x128xf32>
    %26 = vector.extract_strided_slice %25 {offsets = [0, 0], sizes = [8, 32], strides = [1, 1]} : vector<8x128xf32> to vector<8x32xf32>
    %27 = vector.extract_strided_slice %25 {offsets = [0, 32], sizes = [8, 32], strides = [1, 1]} : vector<8x128xf32> to vector<8x32xf32>
    %28 = vector.extract_strided_slice %25 {offsets = [0, 64], sizes = [8, 32], strides = [1, 1]} : vector<8x128xf32> to vector<8x32xf32>
    %cst_15 = arith.constant 2.000000e+00 : f32
    %29 = vector.broadcast %cst_15 : f32 to vector<8x32xf32>
    %30 = arith.mulf %29, %28 : vector<8x32xf32>
    %cst_16 = arith.constant 1.000000e+00 : f32
    %31 = vector.broadcast %cst_16 : f32 to vector<8x32xf32>
    %32 = arith.subf %30, %31 : vector<8x32xf32>
    %33 = vector.extract_strided_slice %25 {offsets = [0, 96], sizes = [8, 32], strides = [1, 1]} : vector<8x128xf32> to vector<8x32xf32>
    %34 = arith.mulf %27, %16 : vector<8x32xf32>
    %35 = arith.mulf %26, %32 : vector<8x32xf32>
    %36 = arith.addf %34, %35 : vector<8x32xf32>
    %37 = math.tanh %36 : vector<8x32xf32>
    %38 = arith.mulf %33, %37 : vector<8x32xf32>
    %c0_i32 = arith.constant 0 : i32
    %39 = vector.broadcast %c0_i32 : i32 to vector<8x1xi32>
    %40 = arith.cmpi sgt, %13, %39 : vector<8x1xi32>
    %41 = vector.shape_cast %40 : vector<8x1xi1> to vector<8x1xi1>
    %42 = vector.broadcast %41 : vector<8x1xi1> to vector<8x32xi1>
    %43 = arith.select %42, %38, %15 : vector<8x32xi1>, vector<8x32xf32>
    %44 = vector.shape_cast %40 : vector<8x1xi1> to vector<8x1xi1>
    %45 = vector.broadcast %44 : vector<8x1xi1> to vector<8x32xi1>
    %46 = arith.select %45, %36, %16 : vector<8x32xi1>, vector<8x32xf32>
    %c8 = arith.constant 8 : index
    %c0_17 = arith.constant 0 : index
    %47 = vector.load %arg10[%c8, %c0_17] : memref<64x128xf32, #tpu.memory_space<vmem>>, vector<8x128xf32>
    %48 = arith.truncf %43 : vector<8x32xf32> to vector<8x32xbf16>
    %cst_18 = arith.constant dense<0.000000e+00> : vector<8x128xf32>
    %49 = tpu.matmul %48, %14, %cst_18 {dimension_numbers = #tpu.dot_dimension_numbers<[1], [0], [0], [1], [0, 0, 1, 1], [], []>} : vector<8x32xbf16>, vector<32x128xbf16>, vector<8x128xf32> -> vector<8x128xf32>
    %50 = arith.addf %47, %49 : vector<8x128xf32>
    %51 = arith.negf %50 : vector<8x128xf32>
    %52 = math.exp %51 : vector<8x128xf32>
    %cst_19 = arith.constant 1.000000e+00 : f32
    %53 = vector.broadcast %cst_19 : f32 to vector<8x128xf32>
    %54 = arith.addf %53, %52 : vector<8x128xf32>
    %55 = arith.divf %53, %54 : vector<8x128xf32>
    %56 = vector.extract_strided_slice %55 {offsets = [0, 0], sizes = [8, 32], strides = [1, 1]} : vector<8x128xf32> to vector<8x32xf32>
    %57 = vector.extract_strided_slice %55 {offsets = [0, 32], sizes = [8, 32], strides = [1, 1]} : vector<8x128xf32> to vector<8x32xf32>
    %58 = vector.extract_strided_slice %55 {offsets = [0, 64], sizes = [8, 32], strides = [1, 1]} : vector<8x128xf32> to vector<8x32xf32>
    %cst_20 = arith.constant 2.000000e+00 : f32
    %59 = vector.broadcast %cst_20 : f32 to vector<8x32xf32>
    %60 = arith.mulf %59, %58 : vector<8x32xf32>
    %cst_21 = arith.constant 1.000000e+00 : f32
    %61 = vector.broadcast %cst_21 : f32 to vector<8x32xf32>
    %62 = arith.subf %60, %61 : vector<8x32xf32>
    %63 = vector.extract_strided_slice %55 {offsets = [0, 96], sizes = [8, 32], strides = [1, 1]} : vector<8x128xf32> to vector<8x32xf32>
    %64 = arith.mulf %57, %46 : vector<8x32xf32>
    %65 = arith.mulf %56, %62 : vector<8x32xf32>
    %66 = arith.addf %64, %65 : vector<8x32xf32>
    %67 = math.tanh %66 : vector<8x32xf32>
    %68 = arith.mulf %63, %67 : vector<8x32xf32>
    %c1_i32 = arith.constant 1 : i32
    %69 = vector.broadcast %c1_i32 : i32 to vector<8x1xi32>
    %70 = arith.cmpi sgt, %13, %69 : vector<8x1xi32>
    %71 = vector.shape_cast %70 : vector<8x1xi1> to vector<8x1xi1>
    %72 = vector.broadcast %71 : vector<8x1xi1> to vector<8x32xi1>
    %73 = arith.select %72, %68, %43 : vector<8x32xi1>, vector<8x32xf32>
    %74 = vector.shape_cast %70 : vector<8x1xi1> to vector<8x1xi1>
    %75 = vector.broadcast %74 : vector<8x1xi1> to vector<8x32xi1>
    %76 = arith.select %75, %66, %46 : vector<8x32xi1>, vector<8x32xf32>
    %c16 = arith.constant 16 : index
    %c0_22 = arith.constant 0 : index
    %77 = vector.load %arg10[%c16, %c0_22] : memref<64x128xf32, #tpu.memory_space<vmem>>, vector<8x128xf32>
    %78 = arith.truncf %73 : vector<8x32xf32> to vector<8x32xbf16>
    %cst_23 = arith.constant dense<0.000000e+00> : vector<8x128xf32>
    %79 = tpu.matmul %78, %14, %cst_23 {dimension_numbers = #tpu.dot_dimension_numbers<[1], [0], [0], [1], [0, 0, 1, 1], [], []>} : vector<8x32xbf16>, vector<32x128xbf16>, vector<8x128xf32> -> vector<8x128xf32>
    %80 = arith.addf %77, %79 : vector<8x128xf32>
    %81 = arith.negf %80 : vector<8x128xf32>
    %82 = math.exp %81 : vector<8x128xf32>
    %cst_24 = arith.constant 1.000000e+00 : f32
    %83 = vector.broadcast %cst_24 : f32 to vector<8x128xf32>
    %84 = arith.addf %83, %82 : vector<8x128xf32>
    %85 = arith.divf %83, %84 : vector<8x128xf32>
    %86 = vector.extract_strided_slice %85 {offsets = [0, 0], sizes = [8, 32], strides = [1, 1]} : vector<8x128xf32> to vector<8x32xf32>
    %87 = vector.extract_strided_slice %85 {offsets = [0, 32], sizes = [8, 32], strides = [1, 1]} : vector<8x128xf32> to vector<8x32xf32>
    %88 = vector.extract_strided_slice %85 {offsets = [0, 64], sizes = [8, 32], strides = [1, 1]} : vector<8x128xf32> to vector<8x32xf32>
    %cst_25 = arith.constant 2.000000e+00 : f32
    %89 = vector.broadcast %cst_25 : f32 to vector<8x32xf32>
    %90 = arith.mulf %89, %88 : vector<8x32xf32>
    %cst_26 = arith.constant 1.000000e+00 : f32
    %91 = vector.broadcast %cst_26 : f32 to vector<8x32xf32>
    %92 = arith.subf %90, %91 : vector<8x32xf32>
    %93 = vector.extract_strided_slice %85 {offsets = [0, 96], sizes = [8, 32], strides = [1, 1]} : vector<8x128xf32> to vector<8x32xf32>
    %94 = arith.mulf %87, %76 : vector<8x32xf32>
    %95 = arith.mulf %86, %92 : vector<8x32xf32>
    %96 = arith.addf %94, %95 : vector<8x32xf32>
    %97 = math.tanh %96 : vector<8x32xf32>
    %98 = arith.mulf %93, %97 : vector<8x32xf32>
    %c2_i32 = arith.constant 2 : i32
    %99 = vector.broadcast %c2_i32 : i32 to vector<8x1xi32>
    %100 = arith.cmpi sgt, %13, %99 : vector<8x1xi32>
    %101 = vector.shape_cast %100 : vector<8x1xi1> to vector<8x1xi1>
    %102 = vector.broadcast %101 : vector<8x1xi1> to vector<8x32xi1>
    %103 = arith.select %102, %98, %73 : vector<8x32xi1>, vector<8x32xf32>
    %104 = vector.shape_cast %100 : vector<8x1xi1> to vector<8x1xi1>
    %105 = vector.broadcast %104 : vector<8x1xi1> to vector<8x32xi1>
    %106 = arith.select %105, %96, %76 : vector<8x32xi1>, vector<8x32xf32>
    %c24 = arith.constant 24 : index
    %c0_27 = arith.constant 0 : index
    %107 = vector.load %arg10[%c24, %c0_27] : memref<64x128xf32, #tpu.memory_space<vmem>>, vector<8x128xf32>
    %108 = arith.truncf %103 : vector<8x32xf32> to vector<8x32xbf16>
    %cst_28 = arith.constant dense<0.000000e+00> : vector<8x128xf32>
    %109 = tpu.matmul %108, %14, %cst_28 {dimension_numbers = #tpu.dot_dimension_numbers<[1], [0], [0], [1], [0, 0, 1, 1], [], []>} : vector<8x32xbf16>, vector<32x128xbf16>, vector<8x128xf32> -> vector<8x128xf32>
    %110 = arith.addf %107, %109 : vector<8x128xf32>
    %111 = arith.negf %110 : vector<8x128xf32>
    %112 = math.exp %111 : vector<8x128xf32>
    %cst_29 = arith.constant 1.000000e+00 : f32
    %113 = vector.broadcast %cst_29 : f32 to vector<8x128xf32>
    %114 = arith.addf %113, %112 : vector<8x128xf32>
    %115 = arith.divf %113, %114 : vector<8x128xf32>
    %116 = vector.extract_strided_slice %115 {offsets = [0, 0], sizes = [8, 32], strides = [1, 1]} : vector<8x128xf32> to vector<8x32xf32>
    %117 = vector.extract_strided_slice %115 {offsets = [0, 32], sizes = [8, 32], strides = [1, 1]} : vector<8x128xf32> to vector<8x32xf32>
    %118 = vector.extract_strided_slice %115 {offsets = [0, 64], sizes = [8, 32], strides = [1, 1]} : vector<8x128xf32> to vector<8x32xf32>
    %cst_30 = arith.constant 2.000000e+00 : f32
    %119 = vector.broadcast %cst_30 : f32 to vector<8x32xf32>
    %120 = arith.mulf %119, %118 : vector<8x32xf32>
    %cst_31 = arith.constant 1.000000e+00 : f32
    %121 = vector.broadcast %cst_31 : f32 to vector<8x32xf32>
    %122 = arith.subf %120, %121 : vector<8x32xf32>
    %123 = vector.extract_strided_slice %115 {offsets = [0, 96], sizes = [8, 32], strides = [1, 1]} : vector<8x128xf32> to vector<8x32xf32>
    %124 = arith.mulf %117, %106 : vector<8x32xf32>
    %125 = arith.mulf %116, %122 : vector<8x32xf32>
    %126 = arith.addf %124, %125 : vector<8x32xf32>
    %127 = math.tanh %126 : vector<8x32xf32>
    %128 = arith.mulf %123, %127 : vector<8x32xf32>
    %c3_i32 = arith.constant 3 : i32
    %129 = vector.broadcast %c3_i32 : i32 to vector<8x1xi32>
    %130 = arith.cmpi sgt, %13, %129 : vector<8x1xi32>
    %131 = vector.shape_cast %130 : vector<8x1xi1> to vector<8x1xi1>
    %132 = vector.broadcast %131 : vector<8x1xi1> to vector<8x32xi1>
    %133 = arith.select %132, %128, %103 : vector<8x32xi1>, vector<8x32xf32>
    %134 = vector.shape_cast %130 : vector<8x1xi1> to vector<8x1xi1>
    %135 = vector.broadcast %134 : vector<8x1xi1> to vector<8x32xi1>
    %136 = arith.select %135, %126, %106 : vector<8x32xi1>, vector<8x32xf32>
    %c32 = arith.constant 32 : index
    %c0_32 = arith.constant 0 : index
    %137 = vector.load %arg10[%c32, %c0_32] : memref<64x128xf32, #tpu.memory_space<vmem>>, vector<8x128xf32>
    %138 = arith.truncf %133 : vector<8x32xf32> to vector<8x32xbf16>
    %cst_33 = arith.constant dense<0.000000e+00> : vector<8x128xf32>
    %139 = tpu.matmul %138, %14, %cst_33 {dimension_numbers = #tpu.dot_dimension_numbers<[1], [0], [0], [1], [0, 0, 1, 1], [], []>} : vector<8x32xbf16>, vector<32x128xbf16>, vector<8x128xf32> -> vector<8x128xf32>
    %140 = arith.addf %137, %139 : vector<8x128xf32>
    %141 = arith.negf %140 : vector<8x128xf32>
    %142 = math.exp %141 : vector<8x128xf32>
    %cst_34 = arith.constant 1.000000e+00 : f32
    %143 = vector.broadcast %cst_34 : f32 to vector<8x128xf32>
    %144 = arith.addf %143, %142 : vector<8x128xf32>
    %145 = arith.divf %143, %144 : vector<8x128xf32>
    %146 = vector.extract_strided_slice %145 {offsets = [0, 0], sizes = [8, 32], strides = [1, 1]} : vector<8x128xf32> to vector<8x32xf32>
    %147 = vector.extract_strided_slice %145 {offsets = [0, 32], sizes = [8, 32], strides = [1, 1]} : vector<8x128xf32> to vector<8x32xf32>
    %148 = vector.extract_strided_slice %145 {offsets = [0, 64], sizes = [8, 32], strides = [1, 1]} : vector<8x128xf32> to vector<8x32xf32>
    %cst_35 = arith.constant 2.000000e+00 : f32
    %149 = vector.broadcast %cst_35 : f32 to vector<8x32xf32>
    %150 = arith.mulf %149, %148 : vector<8x32xf32>
    %cst_36 = arith.constant 1.000000e+00 : f32
    %151 = vector.broadcast %cst_36 : f32 to vector<8x32xf32>
    %152 = arith.subf %150, %151 : vector<8x32xf32>
    %153 = vector.extract_strided_slice %145 {offsets = [0, 96], sizes = [8, 32], strides = [1, 1]} : vector<8x128xf32> to vector<8x32xf32>
    %154 = arith.mulf %147, %136 : vector<8x32xf32>
    %155 = arith.mulf %146, %152 : vector<8x32xf32>
    %156 = arith.addf %154, %155 : vector<8x32xf32>
    %157 = math.tanh %156 : vector<8x32xf32>
    %158 = arith.mulf %153, %157 : vector<8x32xf32>
    %c4_i32 = arith.constant 4 : i32
    %159 = vector.broadcast %c4_i32 : i32 to vector<8x1xi32>
    %160 = arith.cmpi sgt, %13, %159 : vector<8x1xi32>
    %161 = vector.shape_cast %160 : vector<8x1xi1> to vector<8x1xi1>
    %162 = vector.broadcast %161 : vector<8x1xi1> to vector<8x32xi1>
    %163 = arith.select %162, %158, %133 : vector<8x32xi1>, vector<8x32xf32>
    %164 = vector.shape_cast %160 : vector<8x1xi1> to vector<8x1xi1>
    %165 = vector.broadcast %164 : vector<8x1xi1> to vector<8x32xi1>
    %166 = arith.select %165, %156, %136 : vector<8x32xi1>, vector<8x32xf32>
    %c40 = arith.constant 40 : index
    %c0_37 = arith.constant 0 : index
    %167 = vector.load %arg10[%c40, %c0_37] : memref<64x128xf32, #tpu.memory_space<vmem>>, vector<8x128xf32>
    %168 = arith.truncf %163 : vector<8x32xf32> to vector<8x32xbf16>
    %cst_38 = arith.constant dense<0.000000e+00> : vector<8x128xf32>
    %169 = tpu.matmul %168, %14, %cst_38 {dimension_numbers = #tpu.dot_dimension_numbers<[1], [0], [0], [1], [0, 0, 1, 1], [], []>} : vector<8x32xbf16>, vector<32x128xbf16>, vector<8x128xf32> -> vector<8x128xf32>
    %170 = arith.addf %167, %169 : vector<8x128xf32>
    %171 = arith.negf %170 : vector<8x128xf32>
    %172 = math.exp %171 : vector<8x128xf32>
    %cst_39 = arith.constant 1.000000e+00 : f32
    %173 = vector.broadcast %cst_39 : f32 to vector<8x128xf32>
    %174 = arith.addf %173, %172 : vector<8x128xf32>
    %175 = arith.divf %173, %174 : vector<8x128xf32>
    %176 = vector.extract_strided_slice %175 {offsets = [0, 0], sizes = [8, 32], strides = [1, 1]} : vector<8x128xf32> to vector<8x32xf32>
    %177 = vector.extract_strided_slice %175 {offsets = [0, 32], sizes = [8, 32], strides = [1, 1]} : vector<8x128xf32> to vector<8x32xf32>
    %178 = vector.extract_strided_slice %175 {offsets = [0, 64], sizes = [8, 32], strides = [1, 1]} : vector<8x128xf32> to vector<8x32xf32>
    %cst_40 = arith.constant 2.000000e+00 : f32
    %179 = vector.broadcast %cst_40 : f32 to vector<8x32xf32>
    %180 = arith.mulf %179, %178 : vector<8x32xf32>
    %cst_41 = arith.constant 1.000000e+00 : f32
    %181 = vector.broadcast %cst_41 : f32 to vector<8x32xf32>
    %182 = arith.subf %180, %181 : vector<8x32xf32>
    %183 = vector.extract_strided_slice %175 {offsets = [0, 96], sizes = [8, 32], strides = [1, 1]} : vector<8x128xf32> to vector<8x32xf32>
    %184 = arith.mulf %177, %166 : vector<8x32xf32>
    %185 = arith.mulf %176, %182 : vector<8x32xf32>
    %186 = arith.addf %184, %185 : vector<8x32xf32>
    %187 = math.tanh %186 : vector<8x32xf32>
    %188 = arith.mulf %183, %187 : vector<8x32xf32>
    %c5_i32 = arith.constant 5 : i32
    %189 = vector.broadcast %c5_i32 : i32 to vector<8x1xi32>
    %190 = arith.cmpi sgt, %13, %189 : vector<8x1xi32>
    %191 = vector.shape_cast %190 : vector<8x1xi1> to vector<8x1xi1>
    %192 = vector.broadcast %191 : vector<8x1xi1> to vector<8x32xi1>
    %193 = arith.select %192, %188, %163 : vector<8x32xi1>, vector<8x32xf32>
    %194 = vector.shape_cast %190 : vector<8x1xi1> to vector<8x1xi1>
    %195 = vector.broadcast %194 : vector<8x1xi1> to vector<8x32xi1>
    %196 = arith.select %195, %186, %166 : vector<8x32xi1>, vector<8x32xf32>
    %c48 = arith.constant 48 : index
    %c0_42 = arith.constant 0 : index
    %197 = vector.load %arg10[%c48, %c0_42] : memref<64x128xf32, #tpu.memory_space<vmem>>, vector<8x128xf32>
    %198 = arith.truncf %193 : vector<8x32xf32> to vector<8x32xbf16>
    %cst_43 = arith.constant dense<0.000000e+00> : vector<8x128xf32>
    %199 = tpu.matmul %198, %14, %cst_43 {dimension_numbers = #tpu.dot_dimension_numbers<[1], [0], [0], [1], [0, 0, 1, 1], [], []>} : vector<8x32xbf16>, vector<32x128xbf16>, vector<8x128xf32> -> vector<8x128xf32>
    %200 = arith.addf %197, %199 : vector<8x128xf32>
    %201 = arith.negf %200 : vector<8x128xf32>
    %202 = math.exp %201 : vector<8x128xf32>
    %cst_44 = arith.constant 1.000000e+00 : f32
    %203 = vector.broadcast %cst_44 : f32 to vector<8x128xf32>
    %204 = arith.addf %203, %202 : vector<8x128xf32>
    %205 = arith.divf %203, %204 : vector<8x128xf32>
    %206 = vector.extract_strided_slice %205 {offsets = [0, 0], sizes = [8, 32], strides = [1, 1]} : vector<8x128xf32> to vector<8x32xf32>
    %207 = vector.extract_strided_slice %205 {offsets = [0, 32], sizes = [8, 32], strides = [1, 1]} : vector<8x128xf32> to vector<8x32xf32>
    %208 = vector.extract_strided_slice %205 {offsets = [0, 64], sizes = [8, 32], strides = [1, 1]} : vector<8x128xf32> to vector<8x32xf32>
    %cst_45 = arith.constant 2.000000e+00 : f32
    %209 = vector.broadcast %cst_45 : f32 to vector<8x32xf32>
    %210 = arith.mulf %209, %208 : vector<8x32xf32>
    %cst_46 = arith.constant 1.000000e+00 : f32
    %211 = vector.broadcast %cst_46 : f32 to vector<8x32xf32>
    %212 = arith.subf %210, %211 : vector<8x32xf32>
    %213 = vector.extract_strided_slice %205 {offsets = [0, 96], sizes = [8, 32], strides = [1, 1]} : vector<8x128xf32> to vector<8x32xf32>
    %214 = arith.mulf %207, %196 : vector<8x32xf32>
    %215 = arith.mulf %206, %212 : vector<8x32xf32>
    %216 = arith.addf %214, %215 : vector<8x32xf32>
    %217 = math.tanh %216 : vector<8x32xf32>
    %218 = arith.mulf %213, %217 : vector<8x32xf32>
    %c6_i32 = arith.constant 6 : i32
    %219 = vector.broadcast %c6_i32 : i32 to vector<8x1xi32>
    %220 = arith.cmpi sgt, %13, %219 : vector<8x1xi32>
    %221 = vector.shape_cast %220 : vector<8x1xi1> to vector<8x1xi1>
    %222 = vector.broadcast %221 : vector<8x1xi1> to vector<8x32xi1>
    %223 = arith.select %222, %218, %193 : vector<8x32xi1>, vector<8x32xf32>
    %224 = vector.shape_cast %220 : vector<8x1xi1> to vector<8x1xi1>
    %225 = vector.broadcast %224 : vector<8x1xi1> to vector<8x32xi1>
    %226 = arith.select %225, %216, %196 : vector<8x32xi1>, vector<8x32xf32>
    %c56 = arith.constant 56 : index
    %c0_47 = arith.constant 0 : index
    %227 = vector.load %arg10[%c56, %c0_47] : memref<64x128xf32, #tpu.memory_space<vmem>>, vector<8x128xf32>
    %228 = arith.truncf %223 : vector<8x32xf32> to vector<8x32xbf16>
    %cst_48 = arith.constant dense<0.000000e+00> : vector<8x128xf32>
    %229 = tpu.matmul %228, %14, %cst_48 {dimension_numbers = #tpu.dot_dimension_numbers<[1], [0], [0], [1], [0, 0, 1, 1], [], []>} : vector<8x32xbf16>, vector<32x128xbf16>, vector<8x128xf32> -> vector<8x128xf32>
    %230 = arith.addf %227, %229 : vector<8x128xf32>
    %231 = arith.negf %230 : vector<8x128xf32>
    %232 = math.exp %231 : vector<8x128xf32>
    %cst_49 = arith.constant 1.000000e+00 : f32
    %233 = vector.broadcast %cst_49 : f32 to vector<8x128xf32>
    %234 = arith.addf %233, %232 : vector<8x128xf32>
    %235 = arith.divf %233, %234 : vector<8x128xf32>
    %236 = vector.extract_strided_slice %235 {offsets = [0, 0], sizes = [8, 32], strides = [1, 1]} : vector<8x128xf32> to vector<8x32xf32>
    %237 = vector.extract_strided_slice %235 {offsets = [0, 32], sizes = [8, 32], strides = [1, 1]} : vector<8x128xf32> to vector<8x32xf32>
    %238 = vector.extract_strided_slice %235 {offsets = [0, 64], sizes = [8, 32], strides = [1, 1]} : vector<8x128xf32> to vector<8x32xf32>
    %cst_50 = arith.constant 2.000000e+00 : f32
    %239 = vector.broadcast %cst_50 : f32 to vector<8x32xf32>
    %240 = arith.mulf %239, %238 : vector<8x32xf32>
    %cst_51 = arith.constant 1.000000e+00 : f32
    %241 = vector.broadcast %cst_51 : f32 to vector<8x32xf32>
    %242 = arith.subf %240, %241 : vector<8x32xf32>
    %243 = vector.extract_strided_slice %235 {offsets = [0, 96], sizes = [8, 32], strides = [1, 1]} : vector<8x128xf32> to vector<8x32xf32>
    %244 = arith.mulf %237, %226 : vector<8x32xf32>
    %245 = arith.mulf %236, %242 : vector<8x32xf32>
    %246 = arith.addf %244, %245 : vector<8x32xf32>
    %247 = math.tanh %246 : vector<8x32xf32>
    %248 = arith.mulf %243, %247 : vector<8x32xf32>
    %c7_i32 = arith.constant 7 : i32
    %249 = vector.broadcast %c7_i32 : i32 to vector<8x1xi32>
    %250 = arith.cmpi sgt, %13, %249 : vector<8x1xi32>
    %251 = vector.shape_cast %250 : vector<8x1xi1> to vector<8x1xi1>
    %252 = vector.broadcast %251 : vector<8x1xi1> to vector<8x32xi1>
    %253 = arith.select %252, %248, %223 : vector<8x32xi1>, vector<8x32xf32>
    %c0_52 = arith.constant 0 : index
    %c0_53 = arith.constant 0 : index
    %254 = vector.load %arg6[%c0_52, %c0_53] : memref<32x16xf32, #tpu.memory_space<vmem>>, vector<32x16xf32>
    %cst_54 = arith.constant dense<0.000000e+00> : vector<8x16xf32>
    %255 = tpu.matmul %253, %254, %cst_54 {dimension_numbers = #tpu.dot_dimension_numbers<[1], [0], [0], [1], [0, 0, 1, 1], [], []>} : vector<8x32xf32>, vector<32x16xf32>, vector<8x16xf32> -> vector<8x16xf32>
    %c0_55 = arith.constant 0 : index
    %c0_56 = arith.constant 0 : index
    %256 = vector.load %arg3[%c0_55, %c0_56] : memref<8x16xf32, #tpu.memory_space<vmem>>, vector<8x16xf32>
    %257 = arith.addf %255, %256 : vector<8x16xf32>
    %cst_57 = arith.constant 0.000000e+00 : f32
    %258 = vector.broadcast %cst_57 : f32 to vector<8x16xf32>
    %259 = arith.maximumf %257, %258 : vector<8x16xf32>
    %c0_58 = arith.constant 0 : index
    %c0_59 = arith.constant 0 : index
    %260 = vector.load %arg7[%c0_58, %c0_59] : memref<1x16xf32, #tpu.memory_space<vmem>>, vector<1x16xf32>
    %cst_60 = arith.constant dense<0.000000e+00> : vector<1x8xf32>
    %261 = tpu.matmul %260, %259, %cst_60 {dimension_numbers = #tpu.dot_dimension_numbers<[1], [1], [0], [0], [0, 0, 1, 0], [], []>} : vector<1x16xf32>, vector<8x16xf32>, vector<1x8xf32> -> vector<1x8xf32>
    %c0_61 = arith.constant 0 : index
    %c0_62 = arith.constant 0 : index
    %262 = vector.load %arg8[%c0_61, %c0_62] : memref<1x1xf32, #tpu.memory_space<vmem>>, vector<1x1xf32>
    %263 = vector.broadcast %262 : vector<1x1xf32> to vector<1x8xf32>
    %264 = arith.addf %261, %263 : vector<1x8xf32>
    %c0_63 = arith.constant 0 : index
    %c0_64 = arith.constant 0 : index
    %265 = vector.load %arg9[%c0_63, %c0_64] : memref<1x8xf32, #tpu.memory_space<vmem>>, vector<1x8xf32>
    tpu.vector_store %arg9[%c0_63, %c0_64], %264 {strides = array<i32>} : memref<1x8xf32, #tpu.memory_space<vmem>>, vector<1x8xf32>,
    return
  }
  func.func @transform_0(%arg0: i32) -> (i32, i32) {
    %c0_i32 = arith.constant 0 : i32
    %c0_i32_0 = arith.constant 0 : i32
    return %c0_i32, %arg0 : i32, i32
  }
  func.func @transform_1(%arg0: i32) -> (i32, i32) {
    %c0_i32 = arith.constant 0 : i32
    %c0_i32_0 = arith.constant 0 : i32
    return %arg0, %c0_i32 : i32, i32
  }
  func.func @transform_2(%arg0: i32) -> (i32, i32) {
    %c0_i32 = arith.constant 0 : i32
    %c0_i32_0 = arith.constant 0 : i32
    return %arg0, %c0_i32 : i32, i32
  }
  func.func @transform_3(%arg0: i32) -> (i32, i32) {
    %c0_i32 = arith.constant 0 : i32
    %c0_i32_0 = arith.constant 0 : i32
    %c0_i32_1 = arith.constant 0 : i32
    return %c0_i32, %c0_i32_0 : i32, i32
  }
  func.func @transform_4(%arg0: i32) -> (i32, i32) {
    %c0_i32 = arith.constant 0 : i32
    %c0_i32_0 = arith.constant 0 : i32
    %c0_i32_1 = arith.constant 0 : i32
    return %c0_i32, %c0_i32_0 : i32, i32
  }
  func.func @transform_5(%arg0: i32) -> (i32, i32) {
    %c0_i32 = arith.constant 0 : i32
    %c0_i32_0 = arith.constant 0 : i32
    %c0_i32_1 = arith.constant 0 : i32
    return %c0_i32, %c0_i32_0 : i32, i32
  }
  func.func @transform_6(%arg0: i32) -> (i32, i32) {
    %c0_i32 = arith.constant 0 : i32
    %c0_i32_0 = arith.constant 0 : i32
    %c0_i32_1 = arith.constant 0 : i32
    return %c0_i32, %c0_i32_0 : i32, i32
  }
  func.func @transform_7(%arg0: i32) -> (i32, i32) {
    %c0_i32 = arith.constant 0 : i32
    %c0_i32_0 = arith.constant 0 : i32
    %c0_i32_1 = arith.constant 0 : i32
    return %c0_i32, %c0_i32_0 : i32, i32
  }
  func.func @transform_8(%arg0: i32) -> (i32, i32) {
    %c0_i32 = arith.constant 0 : i32
    %c0_i32_0 = arith.constant 0 : i32
    return %c0_i32, %arg0 : i32, i32
  }
}

</mosaic_0001>

<bundles_post_ra>
// kernel: tpu_custom_call.1
= control target key start
LH: loop header
LB: loop body
LE: loop exit
PB: predicated region body
PF: predicated region fallthrough
CT: control target
= control target key end

     0   :  { %s1346_s0 = inlined_call_operand.vmem [shape: s32[8,8], index: 0, kind: input, shape index: {}]   ;;  %s1347_s1 = inlined_call_operand.vmem [shape: s32[8,1], index: 1, kind: input, shape index: {}]   ;;  %s1348_s2 = inlined_call_operand.vmem [shape: f32[8,16], index: 2, kind: input, shape index: {}]   ;;  %s1349_s3 = inlined_call_operand.hbm [shape: bf16[128,128], index: 3, kind: input, shape index: {}]   ;;  %s1350_s4 = inlined_call_operand.vmem [shape: bf16[32,128], index: 4, kind: input, shape index: {}]   ;;  %s1351_s5 = inlined_call_operand.vmem [shape: f32[32,16], index: 5, kind: input, shape index: {}]   ;;  %s1352_s6 = inlined_call_operand.vmem [shape: f32[1,16], index: 6, kind: input, shape index: {}]   ;;  %s1353_s7 = inlined_call_operand.<no memory space> [shape: f32[1,1], index: 7, kind: input, shape index: {}]   ;;  %s1354_s8 = inlined_call_operand.hbm [shape: f32[1,8], index: 8, kind: output, shape index: {}]  }
   0x1   :  { %v13_v0 = vstv %s1353_s7 }
   0x2   :  { %14 = vst [vmem:[#allocation3] sm:$0x1] %v13_v0 }
   0x3   :  { %15 = vsyncpa [#allocation5], 0 }
   0x4   :  { %16 = vsyncpa [#allocation6], 0  ;;  %s27_s9 = sshll.u32 %s1349_s3, 4  ;;  %s1108_s10 = smov [#allocation4]   ;;  %s28_s9 = int_to_ptr.hbm [resolvable:$true] %s27_s9 }
   0x5   :  { %s29_s11 = sshll.u32 %s1108_s10, 4  ;;  %s1109_s12 = smov 64   ;;  %s30_s11 = int_to_ptr.vmem [resolvable:$true] %s29_s11 }
   0x6   :  { %s1110_s13 = smov 4  }
   0x7   :  { %35 = dma.hbm_to_vmem [thread:$0]  %s28_s9, 1024, %s30_s11, [#allocation5], %s1109_s12, %s1109_s12, %s1110_s13  }
   0x8   :  { %1104 = dma.done.wait [#allocation5], 1024  }
   0x9   :  { %1105 = vsyncadd [#allocation5], 4294966272  ;;  %v66_v1 = vlaneseq  ;;  %v1174_v3 = vld [vmem:[%s1346_s0] sm:$0xff]  ;;  %v987_v6 = vld [vmem:[#allocation4 + $0x30] sm:$0xff]  ;;  %v1111_v15 = vmov 0   ;;  %v1112_v19 = vmov 0.0  }
   0xa   :  { %v988_v4 = vld [vmem:[#allocation4 + $0x38] sm:$0xff]  ;;  %v68_v5 = vperm.slane %v1174_v3, 0  ;;  %v986_v7 = vld [vmem:[#allocation4 + $0x28] sm:$0xff]  ;;  %v75_v8 = vperm.slane %v1174_v3, 1  ;;  %v985_v9 = vld [vmem:[#allocation4 + $0x20] sm:$0xff]  ;;  %999 = vset.pattern.permute.xlu2 %v1111_v15  ;;  %1000 = vset.pattern.permute.xlu1 %v1111_v15  ;;  %vm283_vm8 = vcmask 261120  }
   0xb   :  { %v1168_v2 = vshrl.u32 %v66_v1, 7  ;;  %228 = vmatpush.bf16.msra.mxu0 %v988_v4  ;;  %v984_v10 = vld [vmem:[#allocation4 + $0x18] sm:$0xff]  ;;  %v1181_v11 = vld [vmem:[%s1350_s4 + $0x8] sm:$0xff]  ;;  %v983_v12 = vld [vmem:[#allocation4 + $0x10] sm:$0xff]  ;;  %v1205_v17 = vand.u32 127, %v66_v1  ;;  %s1114_s29 = smov [#allocation7]  }
   0xc   :  { %293 = vmatpush.bf16.msra.mxu1 %v1181_v11  ;;  %361 = vmatpush.bf16.msra.mxu2 %v1181_v11  ;;  %v1189_v13 = vld [vmem:[%s1350_s4] sm:$0xff]  ;;  %v982_v14 = vld [vmem:[#allocation4 + $0x8] sm:$0xff]  ;;  %s1113_s4 = smov 32   ;;  %s895_s30 = sshll.u32 %s1114_s29, 4  ;;  %s896_s30 = int_to_ptr.vmem [resolvable:$true] %s895_s30 }
   0xd   :  { %998 = vset.pattern.permute.xlu0 %v1168_v2  ;;  %429 = vmatpush.bf16.msra.mxu3 %v1181_v11  ;;  %v981_v16 = vld [vmem:[#allocation4] sm:$0xff]  ;;  %s897_s11 = sshll.u32 %s1354_s8, 4  ;;  %s898_s11 = int_to_ptr.hbm [resolvable:$true] %s897_s11 }
   0xe   :  { %v1216_v53 = vld [vmem:[%s1347_s1] sm:$0xff] }
   0xf   :  { %229 = vmatpush.bf16.msra.mxu0 %v987_v6  ;;  %vm339_vm6 = vcmp.gt.s32.totalorder %v1216_v53, 0  ;;  %vm407_vm13 = vcmp.gt.s32.totalorder %v1216_v53, 1 }
  0x10   :  { %294 = vmatpush.bf16.msra.mxu1 %v1189_v13  ;;  %362 = vmatpush.bf16.msra.mxu2 %v1189_v13  ;;  %v340_v54 = vsel %vm339_vm6, 1, %v1111_v15 }
  0x11   :  { %430 = vmatpush.bf16.msra.mxu3 %v1189_v13 }
  0x13   :  { %230 = vmatpush.bf16.msra.mxu0 %v986_v7  ;;  %295 = vmatmul.bf16.vlgmr.msra.gmra.mxu1 %v1111_v15 }
  0x14   :  { %497 = vmatpush.bf16.msrb.mxu1 %v1181_v11  ;;  %565 = vmatpush.bf16.msrb.mxu2 %v1181_v11 }
  0x15   :  { %73 = vperm.xlu0 %998, %v68_v5   ;;  %633 = vmatpush.bf16.msrb.mxu3 %v1181_v11 }
  0x17   :  { %231 = vmatpush.bf16.msra.mxu0 %v985_v9 }
  0x18   :  { %498 = vmatpush.bf16.msrb.mxu1 %v1189_v13  ;;  %566 = vmatpush.bf16.msrb.mxu2 %v1189_v13 }
  0x19   :  { %634 = vmatpush.bf16.msrb.mxu3 %v1189_v13 }
  0x1b   :  { %232 = vmatpush.bf16.msra.mxu0 %v984_v10 }
  0x1c   :  { %701 = vmatpush.bf16.msra.mxu1 %v1181_v11 }
  0x1d   :  { %80 = vperm.xlu0 %998, %v75_v8  }
  0x1f   :  { %233 = vmatpush.bf16.msra.mxu0 %v983_v12 }
  0x20   :  { %702 = vmatpush.bf16.msra.mxu1 %v1189_v13 }
  0x23   :  { %234 = vmatpush.bf16.msra.mxu0 %v982_v14 }
  0x27   :  { %235 = vmatpush.bf16.msra.mxu0 %v981_v16 }
  0x87   :  { %v74_v18 = vpop.permute.xlu0 %73 }
  0x88   :  { %vm124_vm0 = vcmp.eq.s32.totalorder %v74_v18, %v1205_v17 }
  0x89   :  { %v907_v20 = vsel %vm124_vm0, 1.0, %v1112_v19 }
  0x8a   :  { %v148_v22 = vpack.c.bf16 %v907_v20, %v907_v20 }
  0x8c   :  { %v164_v25 = vunpack.c.l.b16 %v148_v22 }
  0x8f   :  { %v81_v21 = vpop.permute.xlu0 %80 }
  0x90   :  { %vm125_vm1 = vcmp.eq.s32.totalorder %v81_v21, %v1205_v17  ;;  %v296_v28 = vpop.f32.mrf.mxu1  ;;  %v408_v21 = vsel %vm407_vm13, 1, %v1111_v15 }
  0x91   :  { %v908_v23 = vsel %vm125_vm1, 1.0, %v1112_v19 }
  0x92   :  { %v149_v24 = vpack.c.bf16 %v908_v23, %v908_v23 }
  0x94   :  { %v165_v26 = vunpack.c.l.b16 %v149_v24  ;;  %v82_v24 = vperm.slane %v1174_v3, 2 }
  0x96   :  { %v172_v27 = vpack.c.b16 %v165_v26, %v164_v25 }
  0x98   :  { %236 = vmatmul.bf16.vlgmr.msra.gmra.mxu0 %v172_v27  ;;  %v298_v29 = vpop.f32.mrf.mxu1 }
 0x115   :  { %v237_v30 = vpop.f32.mrf.mxu0 }
 0x116   :  { %v300_v31 = vadd.f32 %v296_v28, %v237_v30  ;;  %v89_v30 = vperm.slane %v1174_v3, 3 }
 0x118   :  { %v955_v32 = vmul.f32 -1.442695, %v300_v31 }
 0x11a   :  { %1008 = vpow2.f32 %v955_v32 }
 0x11d   :  { %v239_v61 = vpop.f32.mrf.mxu0 }
 0x120   :  { %v1009_v33 = vpop.eup %1008 }
 0x121   :  { %v304_v34 = vadd.f32 1.0, %v1009_v33 }
 0x123   :  { %1010 = vrcp.f32 %v304_v34  ;;  %v316_v38 = vand.u32 2147483648, %v304_v34  ;;  %v314_v40 = vand.u32 2147483647, %v304_v34  ;;  %vm310_vm3 = vweird.f32 %v304_v34 }
 0x125   :  { %v317_v42 = vor.u32 1.1754944e-38, %v316_v38  ;;  %vm315_vm5 = vcmp.eq.f32.partialorder %v314_v40, 8.507059e+37 }
 0x129   :  { %v1011_v35 = vpop.eup %1010 }
 0x12a   :  { %v306_v36 = vmul.f32 %v1011_v35, %v304_v34  ;;  %vm311_vm2 = vweird.f32 %v1011_v35 }
 0x12b   :  { %vm312_vm4 = vmor %vm310_vm3, %vm311_vm2 }
 0x12c   :  { %v307_v37 = vsub.f32 1.0, %v306_v36 }
 0x12e   :  { %v308_v39 = vmul.f32 %v1011_v35, %v307_v37 }
 0x130   :  { %v309_v41 = vadd.f32 %v1011_v35, %v308_v39 }
 0x132   :  { %v313_v43 = vsel %vm312_vm4, %v1011_v35, %v309_v41 }
 0x133   :  { %v318_v44 = vsel %vm315_vm5, %v317_v42, %v313_v43  ;;  %vm475_vm5 = vcmp.gt.s32.totalorder %v1216_v53, 2 }
 0x134   :  { %v320_v45 = vmul.f32 2.0, %v318_v44  ;;  %v322_v49 = vmul.f32 0.0, %v318_v44 }
 0x136   :  { %v956_v46 = vadd.f32 -1.0, %v320_v45 }
 0x138   :  { %324 = vrot.lane.b32.xlu1 %v956_v46, %s1109_s12 }
 0x1aa   :  { %v325_v47 = vpop.permute.xlu1 %324 }
 0x1ab   :  { %v327_v48 = vmul.f32 %v325_v47, %v318_v44 }
 0x1ad   :  { %329 = vrot.lane.b32.xlu1 %v327_v48, %s1113_s4 }
 0x21f   :  { %v330_v50 = vpop.permute.xlu1 %329 }
 0x220   :  { %v332_v51 = vadd.f32 %v330_v50, %v322_v49 }
 0x222   :  { %1012 = vtanh.f32 %v332_v51 }
 0x228   :  { %v1013_v52 = vpop.eup %1012 }
 0x229   :  { %335 = vrot.lane.b32.xlu2 %v1013_v52, %s1109_s12 }
 0x231   :  { %342 = vperm.xlu2 %999, %v340_v54  }
 0x239   :  { %1001 = vset.pattern.permute.xlu2 %v1168_v2 }
 0x283   :  { %v336_v55 = vpop.permute.xlu2 %335 }
 0x284   :  { %v338_v56 = vmul.f32 %v336_v55, %v318_v44 }
 0x28b   :  { %v343_v57 = vpop.permute.xlu2 %342 }
 0x28c   :  { %vm344_vm7 = vcmp.eq.s32.totalorder %v343_v57, 1 }
 0x28d   :  { %v345_v58 = vsel %vm344_vm7, %v338_v56, 0.0  ;;  %v1234_v25 = vsel %vm344_vm7, %v332_v51, 0.0 }
 0x28e   :  { %v348_v59 = vpack.c.bf16 %v345_v58, %v345_v58 }
 0x290   :  { %350 = vrot.lane.b32.xlu0 %v348_v59, %s1113_s4 }
 0x302   :  { %v351_v60 = vpop.permute.xlu0 %350 }
 0x303   :  { %957 = vmatmul.msk.bf16.vlgmr.msra.gmra.mxu2 %vm283_vm8, %v351_v60 }
 0x304   :  { %769 = vmatpush.bf16.msra.mxu2 %v1181_v11 }
 0x308   :  { %770 = vmatpush.bf16.msra.mxu2 %v1189_v13 }
 0x386   :  { %v364_v62 = vpop.f32.mrf.mxu2 }
 0x387   :  { %v368_v63 = vadd.f32 %v364_v62, %v239_v61 }
 0x389   :  { %v958_v0 = vmul.f32 -1.442695, %v368_v63 }
 0x38b   :  { %1014 = vpow2.f32 %v958_v0 }
 0x38e   :  { %v366_v1 = vpop.f32.mrf.mxu2 }
 0x391   :  { %v1015_v4 = vpop.eup %1014 }
 0x392   :  { %v372_v5 = vadd.f32 1.0, %v1015_v4  ;;  %v476_v4 = vsel %vm475_vm5, 1, %v1111_v15 }
 0x394   :  { %1016 = vrcp.f32 %v372_v5  ;;  %v384_v9 = vand.u32 2147483648, %v372_v5  ;;  %v382_v12 = vand.u32 2147483647, %v372_v5  ;;  %vm378_vm10 = vweird.f32 %v372_v5 }
 0x396   :  { %v385_v11 = vor.u32 1.1754944e-38, %v384_v9  ;;  %vm383_vm12 = vcmp.eq.f32.partialorder %v382_v12, 8.507059e+37 }
 0x39a   :  { %v1017_v6 = vpop.eup %1016 }
 0x39b   :  { %v374_v7 = vmul.f32 %v1017_v6, %v372_v5  ;;  %vm379_vm9 = vweird.f32 %v1017_v6 }
 0x39c   :  { %vm380_vm11 = vmor %vm378_vm10, %vm379_vm9 }
 0x39d   :  { %v375_v8 = vsub.f32 1.0, %v374_v7 }
 0x39f   :  { %v376_v10 = vmul.f32 %v1017_v6, %v375_v8 }
 0x3a1   :  { %v377_v14 = vadd.f32 %v1017_v6, %v376_v10 }
 0x3a3   :  { %v381_v13 = vsel %vm380_vm11, %v1017_v6, %v377_v14 }
 0x3a4   :  { %v386_v16 = vsel %vm383_vm12, %v385_v11, %v381_v13  ;;  %vm543_vm12 = vcmp.gt.s32.totalorder %v1216_v53, 3 }
 0x3a5   :  { %v388_v18 = vmul.f32 2.0, %v386_v16  ;;  %v390_v26 = vmul.f32 %v386_v16, %v1234_v25 }
 0x3a7   :  { %v959_v20 = vadd.f32 -1.0, %v388_v18 }
 0x3a9   :  { %392 = vrot.lane.b32.xlu1 %v959_v20, %s1109_s12 }
 0x3b1   :  { %410 = vperm.xlu1 %1000, %v408_v21  }
 0x41b   :  { %v393_v22 = vpop.permute.xlu1 %392 }
 0x41c   :  { %v395_v23 = vmul.f32 %v393_v22, %v386_v16 }
 0x41e   :  { %397 = vrot.lane.b32.xlu2 %v395_v23, %s1113_s4 }
 0x423   :  { %v411_v32 = vpop.permute.xlu1 %410 }
 0x424   :  { %vm412_vm15 = vcmp.eq.s32.totalorder %v411_v32, 1 }
 0x426   :  { %87 = vperm.xlu2 %1001, %v82_v24  }
 0x42e   :  { %1002 = vset.pattern.permute.xlu2 %v1111_v15 }
 0x478   :  { %v398_v27 = vpop.permute.xlu2 %397 }
 0x479   :  { %v400_v28 = vadd.f32 %v398_v27, %v390_v26 }
 0x47b   :  { %1018 = vtanh.f32 %v400_v28  ;;  %v414_v7 = vsel %vm412_vm15, %v400_v28, %v1234_v25 }
 0x480   :  { %v88_v31 = vpop.permute.xlu2 %87 }
 0x481   :  { %v1019_v29 = vpop.eup %1018  ;;  %vm126_vm14 = vcmp.eq.s32.totalorder %v88_v31, %v1205_v17 }
 0x482   :  { %403 = vrot.lane.b32.xlu0 %v1019_v29, %s1109_s12  ;;  %v909_v37 = vsel %vm126_vm14, 1.0, %v1112_v19 }
 0x483   :  { %v150_v38 = vpack.c.bf16 %v909_v37, %v909_v37 }
 0x485   :  { %v166_v42 = vunpack.c.l.b16 %v150_v38 }
 0x48a   :  { %94 = vperm.xlu0 %998, %v89_v30  }
 0x4f4   :  { %v404_v33 = vpop.permute.xlu0 %403 }
 0x4f5   :  { %v406_v34 = vmul.f32 %v404_v33, %v386_v16 }
 0x4f7   :  { %v413_v35 = vsel %vm412_vm15, %v406_v34, %v345_v58 }
 0x4f8   :  { %v416_v36 = vpack.c.bf16 %v413_v35, %v413_v35 }
 0x4fa   :  { %418 = vrot.lane.b32.xlu1 %v416_v36, %s1113_s4 }
 0x4fc   :  { %v95_v39 = vpop.permute.xlu0 %94 }
 0x4fd   :  { %vm127_vm0 = vcmp.eq.s32.totalorder %v95_v39, %v1205_v17 }
 0x4fe   :  { %v910_v40 = vsel %vm127_vm0, 1.0, %v1112_v19 }
 0x4ff   :  { %v151_v41 = vpack.c.bf16 %v910_v40, %v910_v40  ;;  %v544_v40 = vsel %vm543_vm12, 1, %v1111_v15 }
 0x501   :  { %v167_v43 = vunpack.c.l.b16 %v151_v41 }
 0x503   :  { %v173_v44 = vpack.c.b16 %v167_v43, %v166_v42  ;;  %v96_v43 = vperm.slane %v1174_v3, 4 }
 0x505   :  { %241 = vmatmul.bf16.gmra.mxu0 %v173_v44 }
 0x56c   :  { %v419_v45 = vpop.permute.xlu1 %418 }
 0x56d   :  { %960 = vmatmul.msk.bf16.vlgmr.msra.gmra.mxu3 %vm283_vm8, %v419_v45 }
 0x582   :  { %v242_v46 = vpop.f32.mrf.mxu0 }
 0x58a   :  { %v244_v21 = vpop.f32.mrf.mxu0 }
 0x5f0   :  { %v432_v47 = vpop.f32.mrf.mxu3 }
 0x5f1   :  { %v436_v48 = vadd.f32 %v432_v47, %v242_v46 }
 0x5f3   :  { %v961_v49 = vmul.f32 -1.442695, %v436_v48 }
 0x5f5   :  { %1020 = vpow2.f32 %v961_v49  ;;  %v103_v49 = vperm.slane %v1174_v3, 5 }
 0x5f8   :  { %v434_v50 = vpop.f32.mrf.mxu3 }
 0x5fb   :  { %v1021_v51 = vpop.eup %1020 }
 0x5fc   :  { %v440_v52 = vadd.f32 1.0, %v1021_v51 }
 0x5fe   :  { %1022 = vrcp.f32 %v440_v52  ;;  %v452_v57 = vand.u32 2147483648, %v440_v52  ;;  %v450_v59 = vand.u32 2147483647, %v440_v52  ;;  %vm446_vm2 = vweird.f32 %v440_v52 }
 0x600   :  { %v453_v61 = vor.u32 1.1754944e-38, %v452_v57  ;;  %vm451_vm4 = vcmp.eq.f32.partialorder %v450_v59, 8.507059e+37 }
 0x604   :  { %v1023_v54 = vpop.eup %1022 }
 0x605   :  { %v442_v55 = vmul.f32 %v1023_v54, %v440_v52  ;;  %vm447_vm1 = vweird.f32 %v1023_v54 }
 0x606   :  { %vm448_vm3 = vmor %vm446_vm2, %vm447_vm1 }
 0x607   :  { %v443_v56 = vsub.f32 1.0, %v442_v55 }
 0x609   :  { %v444_v58 = vmul.f32 %v1023_v54, %v443_v56 }
 0x60b   :  { %v445_v60 = vadd.f32 %v1023_v54, %v444_v58 }
 0x60d   :  { %v449_v62 = vsel %vm448_vm3, %v1023_v54, %v445_v60 }
 0x60e   :  { %v454_v63 = vsel %vm451_vm4, %v453_v61, %v449_v62  ;;  %vm611_vm4 = vcmp.gt.s32.totalorder %v1216_v53, 4 }
 0x60f   :  { %v456_v0 = vmul.f32 2.0, %v454_v63  ;;  %v458_v8 = vmul.f32 %v454_v63, %v414_v7 }
 0x611   :  { %v962_v1 = vadd.f32 -1.0, %v456_v0 }
 0x613   :  { %460 = vrot.lane.b32.xlu2 %v962_v1, %s1109_s12 }
 0x61b   :  { %478 = vperm.xlu2 %1002, %v476_v4  }
 0x623   :  { %1003 = vset.pattern.permute.xlu2 %v1168_v2 }
 0x66d   :  { %v461_v5 = vpop.permute.xlu2 %460 }
 0x66e   :  { %v463_v6 = vmul.f32 %v461_v5, %v454_v63 }
 0x670   :  { %465 = vrot.lane.b32.xlu0 %v463_v6, %s1113_s4 }
 0x675   :  { %v479_v14 = vpop.permute.xlu2 %478 }
 0x676   :  { %vm480_vm6 = vcmp.eq.s32.totalorder %v479_v14, 1 }
 0x6e2   :  { %v466_v9 = vpop.permute.xlu0 %465 }
 0x6e3   :  { %v468_v10 = vadd.f32 %v466_v9, %v458_v8 }
 0x6e5   :  { %1024 = vtanh.f32 %v468_v10  ;;  %v1264_v44 = vsel %vm480_vm6, %v468_v10, %v414_v7 }
 0x6eb   :  { %v1025_v12 = vpop.eup %1024 }
 0x6ec   :  { %471 = vrot.lane.b32.xlu1 %v1025_v12, %s1109_s12 }
 0x75e   :  { %v472_v11 = vpop.permute.xlu1 %471 }
 0x75f   :  { %v474_v13 = vmul.f32 %v472_v11, %v454_v63 }
 0x761   :  { %v481_v16 = vsel %vm480_vm6, %v474_v13, %v413_v35 }
 0x762   :  { %v484_v18 = vpack.c.bf16 %v481_v16, %v481_v16 }
 0x764   :  { %486 = vrot.lane.b32.xlu0 %v484_v18, %s1113_s4 }
 0x7d6   :  { %v487_v20 = vpop.permute.xlu0 %486 }
 0x7d7   :  { %963 = vmatmul.msk.bf16.vlgmr.msrb.gmra.mxu1 %vm283_vm8, %v487_v20 }
 0x854   :  { %v500_v22 = vpop.f32.mrf.mxu1 }
 0x855   :  { %v504_v23 = vadd.f32 %v500_v22, %v244_v21 }
 0x857   :  { %v964_v24 = vmul.f32 -1.442695, %v504_v23 }
 0x859   :  { %1026 = vpow2.f32 %v964_v24 }
 0x85c   :  { %v502_v25 = vpop.f32.mrf.mxu1 }
 0x85f   :  { %v1027_v26 = vpop.eup %1026 }
 0x860   :  { %v508_v27 = vadd.f32 1.0, %v1027_v26  ;;  %v612_v26 = vsel %vm611_vm4, 1, %v1111_v15 }
 0x862   :  { %1028 = vrcp.f32 %v508_v27  ;;  %v520_v31 = vand.u32 2147483648, %v508_v27  ;;  %v518_v33 = vand.u32 2147483647, %v508_v27  ;;  %vm514_vm9 = vweird.f32 %v508_v27 }
 0x864   :  { %v521_v35 = vor.u32 1.1754944e-38, %v520_v31  ;;  %vm519_vm11 = vcmp.eq.f32.partialorder %v518_v33, 8.507059e+37 }
 0x868   :  { %v1029_v28 = vpop.eup %1028 }
 0x869   :  { %v510_v29 = vmul.f32 %v1029_v28, %v508_v27  ;;  %vm515_vm7 = vweird.f32 %v1029_v28 }
 0x86a   :  { %vm516_vm10 = vmor %vm514_vm9, %vm515_vm7 }
 0x86b   :  { %v511_v30 = vsub.f32 1.0, %v510_v29 }
 0x86d   :  { %v512_v32 = vmul.f32 %v1029_v28, %v511_v30 }
 0x86f   :  { %v513_v34 = vadd.f32 %v1029_v28, %v512_v32 }
 0x871   :  { %v517_v36 = vsel %vm516_vm10, %v1029_v28, %v513_v34 }
 0x872   :  { %v522_v37 = vsel %vm519_vm11, %v521_v35, %v517_v36  ;;  %vm679_vm11 = vcmp.gt.s32.totalorder %v1216_v53, 5 }
 0x873   :  { %v524_v38 = vmul.f32 2.0, %v522_v37  ;;  %v526_v45 = vmul.f32 %v522_v37, %v1264_v44 }
 0x875   :  { %v965_v39 = vadd.f32 -1.0, %v524_v38 }
 0x877   :  { %528 = vrot.lane.b32.xlu1 %v965_v39, %s1109_s12 }
 0x87f   :  { %546 = vperm.xlu1 %1000, %v544_v40  }
 0x8e9   :  { %v529_v41 = vpop.permute.xlu1 %528 }
 0x8ea   :  { %v531_v42 = vmul.f32 %v529_v41, %v522_v37 }
 0x8ec   :  { %533 = vrot.lane.b32.xlu2 %v531_v42, %s1113_s4 }
 0x8f1   :  { %v547_v51 = vpop.permute.xlu1 %546 }
 0x8f2   :  { %vm548_vm14 = vcmp.eq.s32.totalorder %v547_v51, 1 }
 0x8f4   :  { %101 = vperm.xlu2 %1003, %v96_v43  }
 0x8fc   :  { %1004 = vset.pattern.permute.xlu2 %v1111_v15 }
 0x946   :  { %v534_v46 = vpop.permute.xlu2 %533 }
 0x947   :  { %v536_v47 = vadd.f32 %v534_v46, %v526_v45 }
 0x949   :  { %1030 = vtanh.f32 %v536_v47  ;;  %v550_v29 = vsel %vm548_vm14, %v536_v47, %v1264_v44 }
 0x94e   :  { %v102_v50 = vpop.permute.xlu2 %101 }
 0x94f   :  { %v1031_v48 = vpop.eup %1030  ;;  %vm128_vm13 = vcmp.eq.s32.totalorder %v102_v50, %v1205_v17 }
 0x950   :  { %539 = vrot.lane.b32.xlu0 %v1031_v48, %s1109_s12  ;;  %v911_v57 = vsel %vm128_vm13, 1.0, %v1112_v19 }
 0x951   :  { %v152_v58 = vpack.c.bf16 %v911_v57, %v911_v57 }
 0x953   :  { %v168_v62 = vunpack.c.l.b16 %v152_v58 }
 0x958   :  { %108 = vperm.xlu0 %998, %v103_v49  }
 0x9c2   :  { %v540_v52 = vpop.permute.xlu0 %539 }
 0x9c3   :  { %v542_v54 = vmul.f32 %v540_v52, %v522_v37 }
 0x9c5   :  { %v549_v55 = vsel %vm548_vm14, %v542_v54, %v481_v16 }
 0x9c6   :  { %v552_v56 = vpack.c.bf16 %v549_v55, %v549_v55 }
 0x9c8   :  { %554 = vrot.lane.b32.xlu1 %v552_v56, %s1113_s4 }
 0x9ca   :  { %v109_v59 = vpop.permute.xlu0 %108 }
 0x9cb   :  { %vm129_vm15 = vcmp.eq.s32.totalorder %v109_v59, %v1205_v17  ;;  %v680_v59 = vsel %vm679_vm11, 1, %v1111_v15 }
 0x9cc   :  { %v912_v60 = vsel %vm129_vm15, 1.0, %v1112_v19 }
 0x9cd   :  { %v153_v61 = vpack.c.bf16 %v912_v60, %v912_v60 }
 0x9cf   :  { %v169_v63 = vunpack.c.l.b16 %v153_v61 }
 0x9d1   :  { %v174_v0 = vpack.c.b16 %v169_v63, %v168_v62  ;;  %v110_v62 = vperm.slane %v1174_v3, 6 }
 0x9d3   :  { %246 = vmatmul.bf16.gmra.mxu0 %v174_v0 }
 0xa3a   :  { %v555_v1 = vpop.permute.xlu1 %554 }
 0xa3b   :  { %966 = vmatmul.msk.bf16.vlgmr.msrb.gmra.mxu2 %vm283_vm8, %v555_v1 }
 0xa50   :  { %v247_v4 = vpop.f32.mrf.mxu0 }
 0xa58   :  { %v249_v39 = vpop.f32.mrf.mxu0 }
 0xabe   :  { %v568_v5 = vpop.f32.mrf.mxu2 }
 0xabf   :  { %v572_v6 = vadd.f32 %v568_v5, %v247_v4 }
 0xac1   :  { %v967_v7 = vmul.f32 -1.442695, %v572_v6  ;;  %v117_v6 = vperm.slane %v1174_v3, 7 }
 0xac3   :  { %1032 = vpow2.f32 %v967_v7 }
 0xac6   :  { %v570_v8 = vpop.f32.mrf.mxu2 }
 0xac9   :  { %v1033_v9 = vpop.eup %1032 }
 0xaca   :  { %v576_v10 = vadd.f32 1.0, %v1033_v9 }
 0xacc   :  { %1034 = vrcp.f32 %v576_v10  ;;  %v588_v13 = vand.u32 2147483648, %v576_v10  ;;  %v586_v18 = vand.u32 2147483647, %v576_v10  ;;  %vm582_vm1 = vweird.f32 %v576_v10 }
 0xace   :  { %v589_v21 = vor.u32 1.1754944e-38, %v588_v13  ;;  %vm587_vm3 = vcmp.eq.f32.partialorder %v586_v18, 8.507059e+37 }
 0xad2   :  { %v1035_v12 = vpop.eup %1034 }
 0xad3   :  { %v578_v14 = vmul.f32 %v1035_v12, %v576_v10  ;;  %vm583_vm0 = vweird.f32 %v1035_v12 }
 0xad4   :  { %vm584_vm2 = vmor %vm582_vm1, %vm583_vm0 }
 0xad5   :  { %v579_v11 = vsub.f32 1.0, %v578_v14 }
 0xad7   :  { %v580_v16 = vmul.f32 %v1035_v12, %v579_v11 }
 0xad9   :  { %v581_v20 = vadd.f32 %v1035_v12, %v580_v16 }
 0xadb   :  { %v585_v22 = vsel %vm584_vm2, %v1035_v12, %v581_v20 }
 0xadc   :  { %v590_v23 = vsel %vm587_vm3, %v589_v21, %v585_v22  ;;  %vm747_vm3 = vcmp.gt.s32.totalorder %v1216_v53, 6 }
 0xadd   :  { %v592_v24 = vmul.f32 2.0, %v590_v23  ;;  %v594_v30 = vmul.f32 %v590_v23, %v550_v29 }
 0xadf   :  { %v968_v25 = vadd.f32 -1.0, %v592_v24 }
 0xae1   :  { %596 = vrot.lane.b32.xlu2 %v968_v25, %s1109_s12 }
 0xae9   :  { %614 = vperm.xlu2 %1004, %v612_v26  }
 0xaf1   :  { %1005 = vset.pattern.permute.xlu2 %v1168_v2 }
 0xb3b   :  { %v597_v27 = vpop.permute.xlu2 %596 }
 0xb3c   :  { %v599_v28 = vmul.f32 %v597_v27, %v590_v23 }
 0xb3e   :  { %601 = vrot.lane.b32.xlu0 %v599_v28, %s1113_s4 }
 0xb43   :  { %v615_v34 = vpop.permute.xlu2 %614 }
 0xb44   :  { %vm616_vm5 = vcmp.eq.s32.totalorder %v615_v34, 1 }
 0xbb0   :  { %v602_v31 = vpop.permute.xlu0 %601 }
 0xbb1   :  { %v604_v32 = vadd.f32 %v602_v31, %v594_v30 }
 0xbb3   :  { %1036 = vtanh.f32 %v604_v32  ;;  %v1294_v63 = vsel %vm616_vm5, %v604_v32, %v550_v29 }
 0xbb9   :  { %v1037_v33 = vpop.eup %1036 }
 0xbba   :  { %607 = vrot.lane.b32.xlu1 %v1037_v33, %s1109_s12 }
 0xc2c   :  { %v608_v35 = vpop.permute.xlu1 %607 }
 0xc2d   :  { %v610_v36 = vmul.f32 %v608_v35, %v590_v23 }
 0xc2f   :  { %v617_v2 = vsel %vm616_vm5, %v610_v36, %v549_v55 }
 0xc30   :  { %v620_v37 = vpack.c.bf16 %v617_v2, %v617_v2 }
 0xc32   :  { %622 = vrot.lane.b32.xlu0 %v620_v37, %s1113_s4 }
 0xca4   :  { %v623_v38 = vpop.permute.xlu0 %622 }
 0xca5   :  { %969 = vmatmul.msk.bf16.vlgmr.msrb.gmra.mxu3 %vm283_vm8, %v623_v38 }
 0xd28   :  { %v636_v40 = vpop.f32.mrf.mxu3 }
 0xd29   :  { %v640_v41 = vadd.f32 %v636_v40, %v249_v39  ;;  %v748_v40 = vsel %vm747_vm3, 1, %v1111_v15 }
 0xd2b   :  { %v970_v42 = vmul.f32 -1.442695, %v640_v41 }
 0xd2d   :  { %1038 = vpow2.f32 %v970_v42 }
 0xd30   :  { %v638_v43 = vpop.f32.mrf.mxu3 }
 0xd33   :  { %v1039_v44 = vpop.eup %1038 }
 0xd34   :  { %v644_v45 = vadd.f32 1.0, %v1039_v44 }
 0xd36   :  { %1040 = vrcp.f32 %v644_v45  ;;  %v656_v49 = vand.u32 2147483648, %v644_v45  ;;  %v654_v51 = vand.u32 2147483647, %v644_v45  ;;  %vm650_vm7 = vweird.f32 %v644_v45 }
 0xd38   :  { %v657_v54 = vor.u32 1.1754944e-38, %v656_v49  ;;  %vm655_vm10 = vcmp.eq.f32.partialorder %v654_v51, 8.507059e+37 }
 0xd3c   :  { %v1041_v46 = vpop.eup %1040 }
 0xd3d   :  { %v646_v47 = vmul.f32 %v1041_v46, %v644_v45  ;;  %vm651_vm6 = vweird.f32 %v1041_v46 }
 0xd3e   :  { %vm652_vm9 = vmor %vm650_vm7, %vm651_vm6 }
 0xd3f   :  { %v647_v48 = vsub.f32 1.0, %v646_v47 }
 0xd41   :  { %v648_v50 = vmul.f32 %v1041_v46, %v647_v48 }
 0xd43   :  { %v649_v52 = vadd.f32 %v1041_v46, %v648_v50 }
 0xd45   :  { %v653_v55 = vsel %vm652_vm9, %v1041_v46, %v649_v52 }
 0xd46   :  { %v658_v56 = vsel %vm655_vm10, %v657_v54, %v653_v55  ;;  %vm815_vm10 = vcmp.gt.s32.totalorder %v1216_v53, 7  ;;  %v825_v53 = vld [vmem:[%s1351_s5 + $0x18] sm:$0xff] }
 0xd47   :  { %v660_v57 = vmul.f32 2.0, %v658_v56  ;;  %v662_v0 = vmul.f32 %v658_v56, %v1294_v63  ;;  %844 = vmatpush.msra.mxu3 %v825_v53 }
 0xd49   :  { %v971_v58 = vadd.f32 -1.0, %v660_v57 }
 0xd4b   :  { %664 = vrot.lane.b32.xlu1 %v971_v58, %s1109_s12 }
 0xd53   :  { %682 = vperm.xlu1 %1000, %v680_v59  }
 0xdbd   :  { %v665_v60 = vpop.permute.xlu1 %664 }
 0xdbe   :  { %v667_v61 = vmul.f32 %v665_v60, %v658_v56 }
 0xdc0   :  { %669 = vrot.lane.b32.xlu2 %v667_v61, %s1113_s4 }
 0xdc5   :  { %v683_v8 = vpop.permute.xlu1 %682 }
 0xdc6   :  { %vm684_vm13 = vcmp.eq.s32.totalorder %v683_v8, 1 }
 0xdc8   :  { %115 = vperm.xlu2 %1005, %v110_v62  }
 0xdd0   :  { %1006 = vset.pattern.permute.xlu2 %v1111_v15 }
 0xe1a   :  { %v670_v1 = vpop.permute.xlu2 %669 }
 0xe1b   :  { %v672_v4 = vadd.f32 %v670_v1, %v662_v0 }
 0xe1d   :  { %1042 = vtanh.f32 %v672_v4  ;;  %v686_v43 = vsel %vm684_vm13, %v672_v4, %v1294_v63 }
 0xe22   :  { %v116_v7 = vpop.permute.xlu2 %115 }
 0xe23   :  { %v1043_v5 = vpop.eup %1042  ;;  %vm130_vm12 = vcmp.eq.s32.totalorder %v116_v7, %v1205_v17 }
 0xe24   :  { %675 = vrot.lane.b32.xlu0 %v1043_v5, %s1109_s12  ;;  %v913_v11 = vsel %vm130_vm12, 1.0, %v1112_v19  ;;  %vm861_vm12 = vcmask 130048  }
 0xe25   :  { %v154_v13 = vpack.c.bf16 %v913_v11, %v913_v11 }
 0xe27   :  { %v170_v20 = vunpack.c.l.b16 %v154_v13 }
 0xe2c   :  { %122 = vperm.xlu0 %998, %v117_v6  }
 0xe34   :  { %1007 = vset.pattern.permute.xlu0 %v1111_v15 }
 0xe96   :  { %v676_v9 = vpop.permute.xlu0 %675 }
 0xe97   :  { %v678_v10 = vmul.f32 %v676_v9, %v658_v56 }
 0xe99   :  { %v685_v12 = vsel %vm684_vm13, %v678_v10, %v617_v2 }
 0xe9a   :  { %v688_v14 = vpack.c.bf16 %v685_v12, %v685_v12 }
 0xe9c   :  { %690 = vrot.lane.b32.xlu1 %v688_v14, %s1113_s4  ;;  %v816_v14 = vsel %vm815_vm10, 1, %v1111_v15  ;;  %v824_v15 = vld [vmem:[%s1351_s5 + $0x10] sm:$0xff] }
 0xe9d   :  { %845 = vmatpush.msra.mxu3 %v824_v15 }
 0xe9e   :  { %v123_v16 = vpop.permute.xlu0 %122 }
 0xe9f   :  { %vm131_vm14 = vcmp.eq.s32.totalorder %v123_v16, %v1205_v17 }
 0xea0   :  { %v914_v3 = vsel %vm131_vm14, 1.0, %v1112_v19 }
 0xea1   :  { %v155_v18 = vpack.c.bf16 %v914_v3, %v914_v3 }
 0xea3   :  { %v171_v21 = vunpack.c.l.b16 %v155_v18 }
 0xea5   :  { %v175_v22 = vpack.c.b16 %v171_v21, %v170_v20 }
 0xea7   :  { %251 = vmatmul.bf16.gmra.mxu0 %v175_v22  ;;  %v823_v22 = vld [vmem:[%s1351_s5 + $0x8] sm:$0xff] }
 0xea8   :  { %846 = vmatpush.msra.mxu3 %v823_v22 }
 0xf0e   :  { %v691_v23 = vpop.permute.xlu1 %690 }
 0xf0f   :  { %972 = vmatmul.msk.bf16.vlgmr.msra.gmra.mxu1 %vm283_vm8, %v691_v23  ;;  %v822_v23 = vld [vmem:[%s1351_s5] sm:$0xff] }
 0xf10   :  { %847 = vmatpush.msra.mxu3 %v822_v23 }
 0xf24   :  { %v252_v24 = vpop.f32.mrf.mxu0 }
 0xf2c   :  { %v254_v55 = vpop.f32.mrf.mxu0 }
 0xf8c   :  { %v704_v25 = vpop.f32.mrf.mxu1 }
 0xf8d   :  { %v708_v26 = vadd.f32 %v704_v25, %v252_v24 }
 0xf8f   :  { %v973_v27 = vmul.f32 -1.442695, %v708_v26 }
 0xf91   :  { %1044 = vpow2.f32 %v973_v27 }
 0xf94   :  { %v706_v28 = vpop.f32.mrf.mxu1 }
 0xf97   :  { %v1045_v29 = vpop.eup %1044 }
 0xf98   :  { %v712_v30 = vadd.f32 1.0, %v1045_v29  ;;  %v854_v29 = vld [vmem:[#allocation3] sm:$0x1] }
 0xf9a   :  { %1046 = vrcp.f32 %v712_v30  ;;  %v724_v32 = vand.u32 2147483648, %v712_v30  ;;  %v722_v34 = vand.u32 2147483647, %v712_v30  ;;  %vm718_vm0 = vweird.f32 %v712_v30 }
 0xf9c   :  { %v725_v36 = vor.u32 1.1754944e-38, %v724_v32  ;;  %vm723_vm2 = vcmp.eq.f32.partialorder %v722_v34, 8.507059e+37  ;;  %v853_v32 = vld [vmem:[%s1352_s6] sm:$0x1] }
 0xfa0   :  { %v1047_v17 = vpop.eup %1046 }
 0xfa1   :  { %v714_v31 = vmul.f32 %v1047_v17, %v712_v30  ;;  %vm719_vm15 = vweird.f32 %v1047_v17  ;;  %v826_v30 = vld [vmem:[%s1348_s2] sm:$0xff] }
 0xfa2   :  { %vm720_vm1 = vmor %vm718_vm0, %vm719_vm15 }
 0xfa3   :  { %v715_v19 = vsub.f32 1.0, %v714_v31 }
 0xfa5   :  { %v716_v33 = vmul.f32 %v1047_v17, %v715_v19 }
 0xfa7   :  { %v717_v35 = vadd.f32 %v1047_v17, %v716_v33 }
 0xfa9   :  { %v721_v2 = vsel %vm720_vm1, %v1047_v17, %v717_v35 }
 0xfaa   :  { %v726_v37 = vsel %vm723_vm2, %v725_v36, %v721_v2 }
 0xfab   :  { %v728_v38 = vmul.f32 2.0, %v726_v37  ;;  %v730_v44 = vmul.f32 %v726_v37, %v686_v43 }
 0xfad   :  { %v974_v39 = vadd.f32 -1.0, %v728_v38 }
 0xfaf   :  { %732 = vrot.lane.b32.xlu2 %v974_v39, %s1109_s12 }
 0xfb7   :  { %750 = vperm.xlu2 %1006, %v748_v40  }
0x1009   :  { %v733_v41 = vpop.permute.xlu2 %732 }
0x100a   :  { %v735_v42 = vmul.f32 %v733_v41, %v726_v37 }
0x100c   :  { %737 = vrot.lane.b32.xlu0 %v735_v42, %s1113_s4 }
0x1011   :  { %v751_v48 = vpop.permute.xlu2 %750 }
0x1012   :  { %vm752_vm4 = vcmp.eq.s32.totalorder %v751_v48, 1 }
0x107e   :  { %v738_v45 = vpop.permute.xlu0 %737 }
0x107f   :  { %v740_v46 = vadd.f32 %v738_v45, %v730_v44 }
0x1081   :  { %1048 = vtanh.f32 %v740_v46  ;;  %v754_v16 = vsel %vm752_vm4, %v740_v46, %v686_v43 }
0x1087   :  { %v1049_v47 = vpop.eup %1048 }
0x1088   :  { %743 = vrot.lane.b32.xlu1 %v1049_v47, %s1109_s12 }
0x10fa   :  { %v744_v49 = vpop.permute.xlu1 %743 }
0x10fb   :  { %v746_v50 = vmul.f32 %v744_v49, %v726_v37 }
0x10fd   :  { %v753_v51 = vsel %vm752_vm4, %v746_v50, %v685_v12 }
0x10fe   :  { %v756_v52 = vpack.c.bf16 %v753_v51, %v753_v51 }
0x1100   :  { %758 = vrot.lane.b32.xlu0 %v756_v52, %s1113_s4 }
0x1172   :  { %v759_v54 = vpop.permute.xlu0 %758 }
0x1173   :  { %975 = vmatmul.msk.bf16.vlgmr.msra.gmra.mxu2 %vm283_vm8, %v759_v54 }
0x11f6   :  { %v772_v56 = vpop.f32.mrf.mxu2 }
0x11f7   :  { %v776_v57 = vadd.f32 %v772_v56, %v254_v55 }
0x11f9   :  { %v976_v58 = vmul.f32 -1.442695, %v776_v57 }
0x11fb   :  { %1050 = vpow2.f32 %v976_v58 }
0x11fe   :  { %v774_v59 = vpop.f32.mrf.mxu2 }
0x1201   :  { %v1051_v60 = vpop.eup %1050 }
0x1202   :  { %v780_v61 = vadd.f32 1.0, %v1051_v60 }
0x1204   :  { %1052 = vrcp.f32 %v780_v61  ;;  %v792_v1 = vand.u32 2147483648, %v780_v61  ;;  %v790_v5 = vand.u32 2147483647, %v780_v61  ;;  %vm786_vm6 = vweird.f32 %v780_v61 }
0x1206   :  { %v793_v7 = vor.u32 1.1754944e-38, %v792_v1  ;;  %vm791_vm9 = vcmp.eq.f32.partialorder %v790_v5, 8.507059e+37 }
0x120a   :  { %v1053_v62 = vpop.eup %1052 }
0x120b   :  { %v782_v63 = vmul.f32 %v1053_v62, %v780_v61  ;;  %vm787_vm5 = vweird.f32 %v1053_v62 }
0x120c   :  { %vm788_vm7 = vmor %vm786_vm6, %vm787_vm5 }
0x120d   :  { %v783_v0 = vsub.f32 1.0, %v782_v63 }
0x120f   :  { %v784_v4 = vmul.f32 %v1053_v62, %v783_v0 }
0x1211   :  { %v785_v6 = vadd.f32 %v1053_v62, %v784_v4 }
0x1213   :  { %v789_v8 = vsel %vm788_vm7, %v1053_v62, %v785_v6 }
0x1214   :  { %v794_v9 = vsel %vm791_vm9, %v793_v7, %v789_v8 }
0x1215   :  { %v796_v10 = vmul.f32 2.0, %v794_v9  ;;  %v798_v3 = vmul.f32 %v794_v9, %v754_v16 }
0x1217   :  { %v977_v12 = vadd.f32 -1.0, %v796_v10 }
0x1219   :  { %800 = vrot.lane.b32.xlu1 %v977_v12, %s1109_s12 }
0x1221   :  { %818 = vperm.xlu1 %1000, %v816_v14  }
0x128b   :  { %v801_v11 = vpop.permute.xlu1 %800 }
0x128c   :  { %v803_v13 = vmul.f32 %v801_v11, %v794_v9 }
0x128e   :  { %805 = vrot.lane.b32.xlu2 %v803_v13, %s1113_s4 }
0x1293   :  { %v819_v24 = vpop.permute.xlu1 %818 }
0x1294   :  { %vm820_vm11 = vcmp.eq.s32.totalorder %v819_v24, 1 }
0x12e8   :  { %v806_v18 = vpop.permute.xlu2 %805 }
0x12e9   :  { %v808_v20 = vadd.f32 %v806_v18, %v798_v3 }
0x12eb   :  { %1054 = vtanh.f32 %v808_v20 }
0x12f1   :  { %v1055_v21 = vpop.eup %1054 }
0x12f2   :  { %811 = vrot.lane.b32.xlu0 %v1055_v21, %s1109_s12 }
0x12fa   :  { %857 = vperm.xlu0 %1007, %v854_v29  }
0x1364   :  { %v812_v25 = vpop.permute.xlu0 %811 }
0x1365   :  { %v814_v26 = vmul.f32 %v812_v25, %v794_v9 }
0x1367   :  { %v821_v27 = vsel %vm820_vm11, %v814_v26, %v753_v51 }
0x1368   :  { %828 = vrot.lane.b32.xlu2 %v821_v27, %s1113_s4 }
0x136c   :  { %v858_v33 = vpop.permute.xlu0 %857 }
0x136d   :  { %v860_v34 = vperm.slane %v858_v33, 0 }
0x13c2   :  { %v829_v28 = vpop.permute.xlu2 %828 }
0x13c3   :  { %978 = vmatmul.msk.f32.vlgmr.msra.gmra.mxu3 %vm283_vm8, %v829_v28  ;;  %vm888_vm8 = vcmask 57344  }
0x1446   :  { %v849_v17 = vpop.f32.mrf.mxu3 }
0x1447   :  { %v850_v31 = vadd.f32 %v849_v17, %v826_v30 }
0x1449   :  { %v852_v19 = vmax.f32 %v850_v31, 0.0 }
0x144b   :  { %979 = vmatpush.xpose.msk.msrb.mxu3 %vm861_vm12, %v852_v19 }
0x144e   :  { %980 = vmatmul.msk.f32.vlgmr.msrb.gmra.mxu3 %vm861_vm12, %v853_v32 }
0x14d1   :  { %v885_v35 = vpop.f32.mrf.mxu3 }
0x14d2   :  { %v886_v36 = vadd.f32 %v885_v35, %v860_v34 }
0x14d4   :  { %889 = vst.msk [vmem:[#allocation7] sm:$0x1] %vm888_vm8, %v886_v36 }
0x14d5   :  { %900 = dma.vmem_to_hbm [thread:$0]  %s896_s30, 16, %s898_s11, [#allocation6]  }
0x14d6   :  { %1106 = dma.done.wait [#allocation6], 16  }
0x14d7   :  { %1107 = vsyncadd [#allocation6], 4294967280 }
0x14d8   :  { %905 = vsyncpa [#allocation5], 1 }
0x14d9   :  { %906 = vsyncpa [#allocation6], 1 }

</bundles_post_ra>
